<compile_context>
chip_gen: v6e
topology: v6e:2x2x1
jax: 0.10.0
libtpu: 0.0.40
codegen_flags: <defaults>
</compile_context>

<pallas_src>
import jax
import jax.numpy as jnp
from jax.experimental import pallas as pl
from jax.experimental.pallas import tpu as pltpu


def _round_up(x: int, m: int) -> int:
    return ((x + m - 1) // m) * m


def _residual_linear_kernel(x_ref, w_ref, b_ref, o_ref):
    # x_ref: (TM, Dp)  input rows (original dtype; residual kept exact)
    # w_ref: (Dp, TN)  weight stripe, bf16 (VMEM-resident / double-buffered)
    # b_ref: (1, TN)   bias, f32
    # o_ref: (TM, TN)
    tn = o_ref.shape[-1]
    x = x_ref[...]
    # MXU matmul: bf16 operands, f32 accumulation.
    y = jnp.dot(
        x.astype(jnp.bfloat16),
        w_ref[...],
        preferred_element_type=jnp.float32,
    )
    # Bias + residual add in f32 (VPU epilogue), single cast on store.
    y = y + b_ref[...]
    col0 = pl.multiple_of(pl.program_id(1) * tn, 128)
    res = x_ref[:, pl.ds(col0, tn)].astype(jnp.float32)
    o_ref[...] = (y + res).astype(o_ref.dtype)


def prepare_residual_linear_params(w, b):
    """One-time parameter prep (hoisted out of the forward pass):
    pad hidden dim to a multiple of 128, cast weight to bf16, bias to f32."""
    D = w.shape[0]
    Dp = _round_up(D, 128)
    if Dp != D:
        w = jnp.pad(w, ((0, Dp - D), (0, Dp - D)))
        b = jnp.pad(b, (0, Dp - D))
    return w.astype(jnp.bfloat16), b.reshape(1, Dp).astype(jnp.float32)


def _choose_tile_m(M: int, tile_m: int) -> int:
    tm = min(tile_m, _round_up(M, 8))
    # Keep >= 2 grid steps along M so both v7x TensorCores get work.
    if M > 8 and pl.cdiv(M, tm) < 2:
        tm = _round_up(pl.cdiv(M, 2), 8)
    return tm


def _choose_tile_n(Dp: int, tile_n) -> int:
    if tile_n is None:
        if Dp <= 1536:        # whole bf16 weight <= ~4.5 MiB: keep it resident
            return Dp
        tile_n = 512          # stripe large weights (v7x VMEM guard)
    tn = min(_round_up(tile_n, 128), Dp)
    # Must divide Dp evenly so the in-kernel residual slice never reads OOB.
    while Dp % tn:
        tn -= 128
    return max(tn, 128)


def _block_spec(shape, index_map, buffer_count=None):
    if buffer_count is not None:
        try:
            return pl.BlockSpec(
                shape, index_map, pipeline_mode=pl.Buffered(buffer_count)
            )
        except TypeError:  # older jax without pipeline_mode: fall back
            pass
    return pl.BlockSpec(shape, index_map)


def residual_add_linear(x, w_bf16, b_f32, *, tile_m=512, tile_n=None):
    """out = (x @ w + b) + x, fused in a single Pallas kernel.

    x:      (B, S, D) activations (f32 or bf16)
    w_bf16: (Dp, Dp)  pre-padded bf16 weight from prepare_residual_linear_params
    b_f32:  (1, Dp)   pre-padded f32 bias
    """
    B, S, D = x.shape
    M = B * S
    Dp = w_bf16.shape[0]

    x2 = x.reshape(M, D)
    if Dp != D:
        # Contraction-dim padding must be explicit zeros: garbage along K
        # would corrupt valid outputs.  (Real ViT hidden sizes skip this.)
        x2 = jnp.pad(x2, ((0, 0), (0, Dp - D)))
    # No row padding / no output slice: Pallas handles the partial last block.

    tm = _choose_tile_m(M, tile_m)
    tn = _choose_tile_n(Dp, tile_n)
    gm = pl.cdiv(M, tm)
    gn = Dp // tn

    # Weight/bias are grid-constant when gn == 1 -> single buffer them.
    w_bufs = 1 if gn == 1 else 2
    b_bufs = 1 if gn == 1 else 2

    itemsize = jnp.dtype(x.dtype).itemsize
    vmem_needed = (
        2 * tm * Dp * itemsize      # x row blocks (double buffered)
        + 2 * tm * tn * itemsize    # out blocks (double buffered)
        + w_bufs * Dp * tn * 2      # bf16 weight
        + b_bufs * tn * 4           # f32 bias
    )
    vmem_limit = max(int(vmem_needed * 1.25) + (4 << 20), 32 << 20)
    try:
        cap = int(pltpu.get_tpu_info().vmem_capacity_bytes)
    except Exception:
        cap = 64 << 20              # conservative (v7x per-core physical)
    vmem_limit = int(min(vmem_limit, int(cap * 0.9)))

    out = pl.pallas_call(
        _residual_linear_kernel,
        out_shape=jax.ShapeDtypeStruct((M, Dp), x.dtype),
        grid=(gm, gn),
        in_specs=[
            # x rows: pipelined over M, resident across the N axis.
            pl.BlockSpec((tm, Dp), lambda i, j: (i, 0)),
            # weight stripe: constant over M; single-buffered when gn == 1.
            _block_spec((Dp, tn), lambda i, j: (0, j), buffer_count=w_bufs),
            # bias stripe.
            _block_spec((1, tn), lambda i, j: (0, j), buffer_count=b_bufs),
        ],
        out_specs=pl.BlockSpec((tm, tn), lambda i, j: (i, j)),
        compiler_params=pltpu.CompilerParams(
            dimension_semantics=("parallel", "parallel"),
            vmem_limit_bytes=vmem_limit,
        ),
    )(x2, w_bf16, b_f32)

    if Dp != D:
        out = out[:, :D]
    return out.reshape(B, S, D)


if __name__ == "__main__":
    # Small ViT-ish shapes: batch=2, seq=8, hidden=32
    B, S, D = 2, 8, 32
    key = jax.random.PRNGKey(0)
    kx, kw, kb = jax.random.split(key, 3)

    x = jax.random.normal(kx, (B, S, D), dtype=jnp.float32)
    w = jax.random.normal(kw, (D, D), dtype=jnp.float32) * 0.02
    b = jax.random.normal(kb, (D,), dtype=jnp.float32) * 0.02

    # One-time parameter prep (hoisted out of the forward pass).
    w_p, b_p = prepare_residual_linear_params(w, b)

    # Reference: fn(x) + x with fn = Linear(D, D), computed in f32.
    ref = jnp.einsum("bsd,de->bse", x, w) + b + x

    out = residual_add_linear(x, w_p, b_p)
    out = jax.block_until_ready(out)

    assert out.shape == x.shape and out.dtype == x.dtype
    # bf16 matmul operands with f32 accumulation -> relaxed tolerance.
    assert jnp.allclose(out, ref, atol=2e-2, rtol=2e-2), "mismatch vs reference"

    print("KERNEL_OK")
</pallas_src>

<mosaic_0001>
module attributes {stable_mosaic.version = 11 : i64} {
  func.func @_residual_linear_kernel(%arg0: i32, %arg1: i32, %arg2: memref<8x128xf32, #tpu.memory_space<vmem>>, %arg3: memref<128x128xbf16, #tpu.memory_space<vmem>>, %arg4: memref<1x128xf32, #tpu.memory_space<vmem>>, %arg5: memref<8x128xf32, #tpu.memory_space<vmem>>) attributes {dimension_semantics = [#tpu.dimension_semantics<parallel>, #tpu.dimension_semantics<parallel>], iteration_bounds = array<i64: 2, 1>, scalar_prefetch = 0 : i64, scratch_operands = 0 : i64, tpu.core_type = #tpu.core_type<tc>, window_params = [{transform_indices = @transform_0, window_bounds = array<i64: 8, 128>}, {pipeline_mode = #tpu.pipeline_mode<synchronous>, transform_indices = @transform_1, window_bounds = array<i64: 128, 128>}, {pipeline_mode = #tpu.pipeline_mode<synchronous>, transform_indices = @transform_2, window_bounds = array<i64: 1, 128>}, {transform_indices = @transform_3, window_bounds = array<i64: 8, 128>}]} {
    %c0 = arith.constant 0 : index
    %c0_0 = arith.constant 0 : index
    %0 = vector.load %arg2[%c0, %c0_0] : memref<8x128xf32, #tpu.memory_space<vmem>>, vector<8x128xf32>
    %1 = arith.truncf %0 : vector<8x128xf32> to vector<8x128xbf16>
    %c0_1 = arith.constant 0 : index
    %c0_2 = arith.constant 0 : index
    %2 = vector.load %arg3[%c0_1, %c0_2] : memref<128x128xbf16, #tpu.memory_space<vmem>>, vector<128x128xbf16>
    %cst = arith.constant dense<0.000000e+00> : vector<8x128xf32>
    %3 = tpu.matmul %1, %2, %cst {dimension_numbers = #tpu.dot_dimension_numbers<[1], [0], [0], [1], [0, 0, 1, 1], [], []>} : vector<8x128xbf16>, vector<128x128xbf16>, vector<8x128xf32> -> vector<8x128xf32>
    %c0_3 = arith.constant 0 : index
    %c0_4 = arith.constant 0 : index
    %4 = vector.load %arg4[%c0_3, %c0_4] : memref<1x128xf32, #tpu.memory_space<vmem>>, vector<1x128xf32>
    %5 = vector.broadcast %4 : vector<1x128xf32> to vector<8x128xf32>
    %6 = arith.addf %3, %5 : vector<8x128xf32>
    %c128_i32 = arith.constant 128 : i32
    %7 = arith.muli %arg1, %c128_i32 : i32
    %8 = tpu.assume_multiple %7, 128 : i32
    %c0_5 = arith.constant 0 : index
    %9 = arith.index_cast %8 : i32 to index
    %10 = vector.load %arg2[%c0_5, %9] : memref<8x128xf32, #tpu.memory_space<vmem>>, vector<8x128xf32>
    %11 = arith.addf %6, %10 : vector<8x128xf32>
    %c0_6 = arith.constant 0 : index
    %c0_7 = arith.constant 0 : index
    %12 = vector.load %arg5[%c0_6, %c0_7] : memref<8x128xf32, #tpu.memory_space<vmem>>, vector<8x128xf32>
    tpu.vector_store %arg5[%c0_6, %c0_7], %11 {strides = array<i32>} : memref<8x128xf32, #tpu.memory_space<vmem>>, vector<8x128xf32>,
    return
  }
  func.func @transform_0(%arg0: i32, %arg1: i32) -> (i32, i32) {
    %c0_i32 = arith.constant 0 : i32
    %c0_i32_0 = arith.constant 0 : i32
    return %arg0, %c0_i32 : i32, i32
  }
  func.func @transform_1(%arg0: i32, %arg1: i32) -> (i32, i32) {
    %c0_i32 = arith.constant 0 : i32
    %c0_i32_0 = arith.constant 0 : i32
    return %c0_i32, %arg1 : i32, i32
  }
  func.func @transform_2(%arg0: i32, %arg1: i32) -> (i32, i32) {
    %c0_i32 = arith.constant 0 : i32
    %c0_i32_0 = arith.constant 0 : i32
    return %c0_i32, %arg1 : i32, i32
  }
  func.func @transform_3(%arg0: i32, %arg1: i32) -> (i32, i32) {
    %c0_i32 = arith.constant 0 : i32
    return %arg0, %arg1 : i32, i32
  }
}

</mosaic_0001>

<bundles_post_ra>
// kernel: tpu_custom_call.1
= control target key start
LH: loop header
LB: loop body
LE: loop exit
PB: predicated region body
PF: predicated region fallthrough
CT: control target
= control target key end

     0   :  { %8 = vsyncpa [#allocation3], 0  ;;  %s968_s0 = inlined_call_operand.hbm [shape: f32[16,128], index: 0, kind: input, shape index: {}]   ;;  %s969_s1 = inlined_call_operand.hbm [shape: bf16[128,128], index: 1, kind: input, shape index: {}]   ;;  %s970_s2 = inlined_call_operand.vmem [shape: f32[1,128], index: 2, kind: input, shape index: {}]   ;;  %s971_s3 = inlined_call_operand.hbm [shape: f32[16,128], index: 3, kind: output, shape index: {}]  }
   0x1   :  { %10 = vsyncpa [#allocation3 + $0x1], 0 }
   0x2   :  { %11 = vsyncpa [#allocation6], 0 }
   0x3   :  { %12 = vsyncpa [#allocation4], 0 }
   0x4   :  { %14 = vsyncpa [#allocation4 + $0x1], 0  ;;  %s782_s12 = smov 0   ;;  %s784_s13 = smov 0  }
   0x5   :  { %s786_s14 = smov 0   ;;  %s788_s15 = smov 0  }
   0x6   :  { %s790_s16 = smov 0   ;;  %s792_s17 = smov 0  }
   0x7 LB: > { %s476_s18 = sadd.s32 4294967295, %s753_s17   ;;  %s477_s19 = sadd.s32 4294967294, %s753_s17   ;;  %s753_s17 = sphi %s792_s17, %s20_s17   ;;  %s749_s16 = sphi %s790_s16, %s989_s16   ;;  %s745_s15 = sphi %s788_s15, %s988_s15   ;;  %s741_s14 = sphi %s786_s14, %s987_s14   ;;  %s737_s13 = sphi %s784_s13, %s986_s13   ;;  %s733_s12 = sphi %s782_s12, %s985_s12  }
   0x8   : > { %p52_p0 = scmp.ne.s32.totalorder %s737_s13, %s733_s12  ;;  %p816_p1 = scmp.eq.s32.totalorder %s476_s18, 0 }
   0x9   : > { %p820_p2 = scmp.eq.s32.totalorder %s476_s18, 1  ;;  %p136_p3 = scmp.eq.s32.totalorder %s477_s19, 1 }
   0xa   : > { %p826_p4 = por %p816_p1, %p52_p0  ;;  %p478_p5 = scmp.ge.s32.totalorder %s753_s17, 1 }
   0xb   : > { %p831_p6 = por %p136_p3, %p52_p0  ;;  %p143_p7 = scmp.lt.s32.totalorder %s753_s17, 3 }
   0xc   : > { %s975_s22 = scalar_select %p826_p4, 1, 0 }
   0xd   : > { %s976_s23 = scalar_select %p831_p6, 1, 0 }
   0xe   : > { %p836_p8 = pnand %p478_p5, %p143_p7  ;;  %s755_s25 = smov [#allocation5]  }
   0xf   : > { %s157_s26 = sshll.u32 %s755_s25, 4  ;;  %s32_s28 = sadd.s32 1, %s749_s16  ;;  %s158_s26 = int_to_ptr.vmem [resolvable:$true] %s157_s26 }
  0x10   : > { %p538_p9 = pneg %p836_p8  ;;  %s626_s29 = scalar_lea.vmem %s158_s26, 1024 }
  0x11   : > { %p627_p13 = scmp.ne.s32.totalorder %s158_s26, %s626_s29  ;;  %p634_p5 = scmp.lt.s32.totalorder %s158_s26, %s158_s26 }
  0x12   : > { %p845_p11 = pnand %p538_p9, %p816_p1  ;;  %p635_p7 = scmp.lt.s32.totalorder %s626_s29, %s626_s29 }
  0x14   : > { %p617_p12 = pneg %p845_p11  ;;  %p636_p6 = por %p635_p7, %p634_p5 }
  0x16   : > { %p629_p0 = pnand %p627_p13, %p617_p12 }
  0x18   : > { %p630_p3 = pneg %p629_p0 }
  0x1a   : > { %p637_p4 = pnand %p636_p6, %p630_p3 }
  0x1c   : > { %640 = shalt.err (!%p637_p4)
}
  0x1d   : > { %s756_s30 = smov 64   ;;  %s757_s4 = smov 4  }
  0x1e   : > { %541 = dma.hbm_to_vmem [thread:$0]  (!%p845_p11), %s969_s1, 1024, %s158_s26, [#allocation6], %s756_s30, %s756_s30, %s757_s4  }
  0x1f   : > { %p34_p6 = scmp.ge.s32.totalorder %s32_s28, 2  ;;  %s39_s7 = sadd.s32 1, %s741_s14 }
  0x20   : > { %p46_p4 = scmp.ne.s32.totalorder %s741_s14, %s737_s13  ;;  %p47_p9 = scmp.eq.s32.totalorder %s753_s17, 0 }
  0x21   : > { %s991_s28 = smov (%p34_p6, %s32_s28), 0  ;;  %p551_p0 = scmp.lt.s32.totalorder %s753_s17, 2 }
  0x22   : > { %p863_p12 = por %p47_p9, %p46_p4  ;;  %p869_p13 = por %p820_p2, %p46_p4 }
  0x23   : > { %s36_s10 = ssub.s32 %s749_s16, %s991_s28  ;;  %s177_s11 = sand.u32 1, %s741_s14  }
  0x24   : > { %p37_p11 = scmp.eq.s32.totalorder %s36_s10, 0  ;;  %s482_s18 = sshll.u32 %s177_s11, 3 }
  0x25   : > { %s483_s25 = sshll.u32 %s749_s16, 7  ;;  %s181_s30 = scalar_lea.vmem [#allocation2], %s482_s18 }
  0x26   : > { %s878_s19 = scalar_select %p37_p11, %s741_s14, %s39_s7  }
  0x27   : > { %s186_s29 = scalar_lea.hbm %s968_s0, %s483_s25  ;;  %s188_s4 = sshll.u32 %s181_s30, 4  ;;  %s189_s4 = int_to_ptr.vmem [resolvable:$true] %s188_s4 }
  0x28   : > { %p886_p2 = pnand %p551_p0, %p863_p12  ;;  %s178_s5 = scalar_lea.sflag [#allocation3], %s177_s11 }
  0x29   : > { %s654_s6 = scalar_lea.vmem %s189_s4, 128  ;;  %s758_s7 = smov [#allocation2]  }
  0x2a   : > { %p643_p3 = pneg %p886_p2  ;;  %p655_p5 = scmp.ne.s32.totalorder %s189_s4, %s654_s6 }
  0x2b   : > { %s659_s10 = sshll.u32 %s758_s7, 4  ;;  %s660_s10 = int_to_ptr.vmem [resolvable:$false] %s659_s10 }
  0x2c   : > { %p657_p7 = pnand %p655_p5, %p643_p3  ;;  %s661_s25 = scalar_lea.vmem %s660_s10, 256 }
  0x2d   : > { %p662_p4 = scmp.lt.s32.totalorder %s189_s4, %s660_s10  ;;  %p663_p9 = scmp.lt.s32.totalorder %s661_s25, %s654_s6 }
  0x2e   : > { %p658_p6 = pneg %p657_p7 }
  0x2f   : > { %p664_p11 = por %p663_p9, %p662_p4 }
  0x31   : > { %p665_p10 = pnand %p664_p11, %p658_p6 }
  0x33   : > { %668 = shalt.err (!%p665_p10)
}
  0x34   : > { %545 = dma.hbm_to_vmem [thread:$0]  (!%p886_p2), %s186_s29, 128, %s189_s4, %s178_s5  }
  0x35   : > { %197 = sbr.rel (%p836_p8) target bundleno = 305 (0x131), region = 32  ;;  %s897_s8 = sand.u32 (!%p836_p8), 1, %s737_s13  }
  0x36   : > { %s485_s11 = sshll.u32 (!%p836_p8), %s897_s8, 3  ;;  %s200_s18 = scalar_lea.sflag (!%p836_p8), [#allocation3], %s897_s8 }
  0x37   : > { %s203_s26 = scalar_lea.vmem (!%p836_p8), [#allocation2], %s485_s11  ;;  %p982_p12 = scmp.ne.s32.totalorder (!%p836_p8), %s975_s22, 0 }
  0x3a   : > { %720 = dma.done.wait (%p982_p12), %s200_s18, 128  }
  0x3b   : > { %722 = vsyncadd (%p982_p12), %s200_s18, 4294967168 }
  0x3c   : > { %724 = dma.done.wait (%p816_p1), [#allocation6], 1024  }
  0x3d   : > { %726 = vsyncadd (%p816_p1), [#allocation6], 4294966272  ;;  %v759_v0 = vmov 0.0   ;;  %vm760_vm0 = vmmov 0   ;;  %v607_v1 = vld [vmem:[#allocation5 + $0x38] sm:$0xff]   ;;  %v608_v2 = vld [vmem:[#allocation5 + $0x30] sm:$0xff]  }
  0x3e   : > { %510 = vmatprep.subr.bf16.mxu0 %v759_v0  ;;  %526 = vmatprep.mubr.msk.bf16.mxu0 %vm760_vm0, %v759_v0  ;;  %v609_v3 = vld [vmem:[#allocation5 + $0x28] sm:$0xff]   ;;  %v610_v4 = vld [vmem:[#allocation5 + $0x20] sm:$0xff]   ;;  %v611_v5 = vld [vmem:[#allocation5 + $0x18] sm:$0xff]   ;;  %s498_s24 = sshll.u32 %s745_s15, 7  ;;  %s232_s27 = scalar_lea.vmem [#allocation7], %s485_s11 }
  0x3f   : > { %511 = vmatpush3.bf16.msra.mxu0 %v607_v1  ;;  %v612_v6 = vld [vmem:[#allocation5 + $0x10] sm:$0xff]   ;;  %v613_v7 = vld [vmem:[#allocation5 + $0x8] sm:$0xff]   ;;  %v614_v8 = vld [vmem:[#allocation5] sm:$0xff]   ;;  %s372_s29 = sshll.u32 %s232_s27, 4  ;;  %s920_s21 = scalar_lea.hbm %s971_s3, %s498_s24  ;;  %s922_s29 = int_to_ptr.vmem [resolvable:$true] %s372_s29 }
  0x40   : > { %512 = vmatprep.subr.bf16.mxu0 %v759_v0  ;;  %v237_v9 = vld [vmem:[%s203_s26] sm:$0xff]  ;;  %s358_s15 = scalar_lea.sflag [#allocation4], %s897_s8  ;;  %s669_s5 = scalar_lea.vmem %s922_s29, 128 }
  0x41   : > { %v238_v10 = vpack.c.bf16 %v237_v9, %v237_v9  ;;  %v488_v11 = vld [vmem:[%s970_s2] ss:$0 sm:$0xff]  ;;  %p670_p1 = scmp.ne.s32.totalorder %s922_s29, %s669_s5  ;;  %s761_s6 = smov [#allocation7]  }
  0x42   : > { %s673_s7 = sshll.u32 %s761_s6, 4  ;;  %s674_s7 = int_to_ptr.vmem [resolvable:$false] %s673_s7 }
  0x43   : > { %513 = vmatpush3.bf16.msra.mxu0 %v608_v2  ;;  %p671_p8 = pnand %p670_p1, %p869_p13  ;;  %s675_s10 = scalar_lea.vmem %s674_s7, 256 }
  0x44   : > { %514 = vmatprep.subr.bf16.mxu0 %v759_v0  ;;  %p676_p0 = scmp.lt.s32.totalorder %s922_s29, %s674_s7  ;;  %p677_p2 = scmp.lt.s32.totalorder %s675_s10, %s669_s5 }
  0x45   : > { %p672_p10 = pneg %p671_p8 }
  0x46   : > { %p678_p3 = por %p677_p2, %p676_p0 }
  0x47   : > { %515 = vmatpush3.bf16.msra.mxu0 %v609_v3 }
  0x48   : > { %516 = vmatprep.subr.bf16.mxu0 %v759_v0  ;;  %p679_p5 = pnand %p678_p3, %p672_p10 }
  0x4b   : > { %517 = vmatpush3.bf16.msra.mxu0 %v610_v4 }
  0x4c   : > { %518 = vmatprep.subr.bf16.mxu0 %v759_v0 }
  0x4f   : > { %519 = vmatpush3.bf16.msra.mxu0 %v611_v5 }
  0x50   : > { %520 = vmatprep.subr.bf16.mxu0 %v759_v0 }
  0x53   : > { %521 = vmatpush3.bf16.msra.mxu0 %v612_v6 }
  0x54   : > { %522 = vmatprep.subr.bf16.mxu0 %v759_v0 }
  0x57   : > { %523 = vmatpush3.bf16.msra.mxu0 %v613_v7 }
  0x58   : > { %524 = vmatprep.subr.bf16.mxu0 %v759_v0 }
  0x5b   : > { %525 = vmatpush3.bf16.msra.mxu0 %v614_v8 }
  0x5e   : > { %527 = vmatmul.mubr.bf16.vlgmr.msra.gmra.mxu0 %v238_v10 }
 0x11e   : > { %v344_v12 = vpop.f32.mrf.mxu0 }
 0x11f   : > { %v345_v13 = vadd.f32 %v488_v11, %v344_v12 }
 0x120   : > { %v528_v14 = vpop.f32.mrf.mxu0 }
 0x121   : > { %v355_v15 = vadd.f32 %v345_v13, %v237_v9 }
 0x122   : > { %v347_v16 = vpop.f32.mrf.mxu0 }
 0x123   : > { %356 = vst [vmem:[%s232_s27] sm:$0xff] %v355_v15 }
 0x124   : > { %v529_v17 = vpop.f32.mrf.mxu0 }
 0x125   : > { %682 = shalt.err (!%p679_p5)
}
 0x126   : > { %s683_s25 = scalar_lea.hbm %s920_s21, 128  ;;  %s687_s18 = scalar_lea.hbm %s971_s3, 256 }
 0x127   : > { %p684_p7 = scmp.ne.s32.totalorder %s920_s21, %s683_s25  ;;  %p688_p9 = scmp.lt.s32.totalorder %s920_s21, %s971_s3 }
 0x128   : > { %p689_p11 = scmp.lt.s32.totalorder %s687_s18, %s683_s25 }
 0x129   : > { %p685_p6 = pnand %p684_p7, %p869_p13 }
 0x12a   : > { %p690_p12 = por %p689_p11, %p688_p9 }
 0x12b   : > { %p686_p4 = pneg %p685_p6 }
 0x12d   : > { %p691_p1 = pnand %p690_p12, %p686_p4 }
 0x12f   : > { %694 = shalt.err (!%p691_p1)
}
 0x130   : > { %536 = dma.vmem_to_hbm [thread:$0]  (%p869_p13), %s922_s29, 128, %s920_s21, %s358_s15  }
 0x131 PF: > { %s384_s22 = sand.u32 1, %s733_s12   ;;  %p983_p8 = scmp.ne.s32.totalorder %s976_s23, 0 }
 0x132   : > { %p984_p10 = scmp.ge.s32.totalorder %s753_s17, 2  ;;  %s385_s24 = scalar_lea.sflag [#allocation4], %s384_s22 }
 0x134   : > { %p547_p0 = pnand %p984_p10, %p983_p8 }
 0x136   : > { %p548_p2 = pneg %p547_p0 }
 0x138   : > { %728 = dma.done.wait (%p548_p2), %s385_s24, 128  }
 0x139   : > { %730 = vsyncadd (%p548_p2), %s385_s24, 4294967168  ;;  %s20_s17 = sadd.s32 1, %s753_s17   ;;  %s985_s12 = smov %s737_s13 }
 0x13a   : > { %p17_p3 = scmp.ge.s32.totalorder %s20_s17, 4   ;;  %s986_s13 = smov %s741_s14 }
 0x13b   : > { %s987_s14 = smov %s878_s19  ;;  %s988_s15 = smov %s749_s16 }
 0x13c   : > { %s989_s16 = smov %s991_s28  ;;  %19 = sbr.rel (!%p17_p3) target bundleno = 7 (0x7), region = 86 }
 0x141   :  { %390 = vsyncpa [#allocation3], 1 }
 0x142   :  { %392 = vsyncpa [#allocation3 + $0x1], 1 }
 0x143   :  { %393 = vsyncpa [#allocation6], 1 }
 0x144   :  { %394 = vsyncpa [#allocation4], 1 }
 0x145   :  { %396 = vsyncpa [#allocation4 + $0x1], 1 }

</bundles_post_ra>
